<compile_context>
chip_gen: v5e
topology: v5e:2x2
jax: 0.10.0
libtpu: 0.0.40
codegen_flags: <defaults>
</compile_context>

<pallas_src>
import jax
import jax.numpy as jnp
from jax.experimental import pallas as pl
from jax.experimental.pallas import tpu as pltpu

H1, H2, H3, H4 = 128, 64, 32, 16   # shared_layer1..4 widths


def net_kernel(x_ref, p1_ref, p2_ref, p3_ref, p4_ref, ph_ref, o_ref):
    x = x_ref[...]                                        # (1, tb)  batch on lanes

    # shared_layer1: K=1 rank-1 outer product -> VPU broadcast mul (no MXU).
    p1 = p1_ref[...]                                      # (128, 2) = [w1 | b1]
    h1 = jnp.maximum(p1[:, 0:1] * x + p1[:, 1:2], 0.0)    # (128, tb)

    # shared_layer2: (64,128) @ (128,tb)
    p2 = p2_ref[...]                                      # (64, 129) = [W2 | b2]
    h2 = jnp.maximum(
        jnp.dot(p2[:, :H1], h1, preferred_element_type=jnp.float32)
        + p2[:, H1:H1 + 1], 0.0)                          # (64, tb)

    # shared_layer3: (32,64) @ (64,tb)
    p3 = p3_ref[...]                                      # (32, 65) = [W3 | b3]
    h3 = jnp.maximum(
        jnp.dot(p3[:, :H2], h2, preferred_element_type=jnp.float32)
        + p3[:, H2:H2 + 1], 0.0)                          # (32, tb)

    # shared_layer4: (16,32) @ (32,tb)
    p4 = p4_ref[...]                                      # (16, 33) = [W4 | b4]
    h4 = jnp.maximum(
        jnp.dot(p4[:, :H3], h3, preferred_element_type=jnp.float32)
        + p4[:, H3:H3 + 1], 0.0)                          # (16, tb)

    # Fused heads: block-diagonal (2,48) weight over [h3; h4] -> (2, tb) slab.
    h34 = jnp.concatenate([h3, h4], axis=0)               # (48, tb), sublane concat
    ph = ph_ref[...]                                      # (2, 49) = [W_head | b_head]
    o_ref[...] = (jnp.dot(ph[:, :H3 + H4], h34,
                          preferred_element_type=jnp.float32)
                  + ph[:, H3 + H4:H3 + H4 + 1])           # (2, tb) lane-dense store


def pack_params(p):
    """Pack PyTorch-style (out,in) weights / (out,) biases into per-layer [W|b] slabs."""
    def cat(w, b):
        return jnp.concatenate(
            [jnp.asarray(w, jnp.float32), jnp.asarray(b, jnp.float32)[:, None]],
            axis=1)

    # Block-diagonal fused head: row 0 = out_put_x over h3, row 1 = out_put_y over h4.
    wh = jnp.zeros((2, H3 + H4), jnp.float32)
    wh = wh.at[0, :H3].set(p["wx"][0])
    wh = wh.at[1, H3:].set(p["wy"][0])
    bh = jnp.stack([p["bx"][0], p["by"][0]])
    return (cat(p["w1"], p["b1"]),     # (128, 2)
            cat(p["w2"], p["b2"]),     # (64, 129)
            cat(p["w3"], p["b3"]),     # (32, 65)
            cat(p["w4"], p["b4"]),     # (16, 33)
            cat(wh, bh))               # (2, 49)


def net_forward(x, packed, *, tb=512):
    """x: any shape with B elements (PyTorch reshape(-1,1)). Returns (B, 2) float32."""
    x = jnp.asarray(x, jnp.float32).reshape(-1)           # PyTorch: x.reshape(-1, 1)
    B = x.shape[0]

    # Batch tile: multiple of 128 on the lane axis; keep >= 2 grid steps when the
    # batch allows so the "parallel" axis can shard across two TensorCores.
    tb = max(128, (min(tb, 2048) // 128) * 128)
    if B > 128 and 2 * tb > B:
        tb = max(128, (pl.cdiv(B, 2) + 127) // 128 * 128)

    n_steps = pl.cdiv(B, tb)
    B_pad = n_steps * tb
    x_t = jnp.pad(x, (0, B_pad - B)).reshape(1, B_pad)    # batch on the lane axis

    p1, p2, p3, p4, ph = packed

    def full_spec(arr):
        # Small resident parameter slab: constant block index -> fetched once.
        return pl.BlockSpec(arr.shape, lambda i: (0, 0))

    out_t = pl.pallas_call(
        net_kernel,
        out_shape=jax.ShapeDtypeStruct((2, B_pad), jnp.float32),
        grid_spec=pltpu.PrefetchScalarGridSpec(
            num_scalar_prefetch=0,
            grid=(n_steps,),
            in_specs=[
                pl.BlockSpec((1, tb), lambda i: (0, i)),   # x tile over batch lanes
                full_spec(p1), full_spec(p2), full_spec(p3),
                full_spec(p4), full_spec(ph),
            ],
            out_specs=pl.BlockSpec((2, tb), lambda i: (0, i)),
        ),
        compiler_params=pltpu.CompilerParams(
            dimension_semantics=("parallel",)),
    )(x_t, p1, p2, p3, p4, ph)

    return out_t.T[:B]                                     # (B, 2)


def init_params(key):
    """Deterministic PyTorch-style init: weight (out, in), bias (out,)."""
    sizes = {
        "1": (1, H1),    # shared_layer1
        "2": (H1, H2),   # shared_layer2
        "3": (H2, H3),   # shared_layer3
        "x": (H3, 1),    # out_put_x
        "4": (H3, H4),   # shared_layer4
        "y": (H4, 1),    # out_put_y
    }
    params = {}
    for name, (fin, fout) in sizes.items():
        key, kw, kb = jax.random.split(key, 3)
        bound = 1.0 / (fin ** 0.5)   # PyTorch nn.Linear default init range
        params[f"w{name}"] = jax.random.uniform(
            kw, (fout, fin), jnp.float32, -bound, bound)
        params[f"b{name}"] = jax.random.uniform(
            kb, (fout,), jnp.float32, -bound, bound)
    return params


def net_forward_ref(x, p):
    """Pure-JAX reference matching the PyTorch forward."""
    x = jnp.asarray(x, jnp.float32).reshape(-1, 1)
    h = jnp.maximum(x @ p["w1"].T + p["b1"], 0.0)
    h = jnp.maximum(h @ p["w2"].T + p["b2"], 0.0)
    h = jnp.maximum(h @ p["w3"].T + p["b3"], 0.0)
    ox = h @ p["wx"].T + p["bx"]
    h4 = jnp.maximum(h @ p["w4"].T + p["b4"], 0.0)
    oy = h4 @ p["wy"].T + p["by"]
    return jnp.concatenate([ox, oy], axis=1)


if __name__ == "__main__":
    key = jax.random.PRNGKey(0)
    kp, kx = jax.random.split(key)
    params = init_params(kp)
    packed = pack_params(params)

    # Small, non-multiple-of-128 batch: exercises padding + 2 grid steps (tb=128).
    B = 200
    x = jax.random.normal(kx, (B, 1), jnp.float32)   # scalar time input per row

    fwd = jax.jit(lambda xx: net_forward(xx, packed, tb=512))
    out = jax.block_until_ready(fwd(x))

    ref = net_forward_ref(x, params)
    assert out.shape == (B, 2)
    assert jnp.allclose(out, ref, atol=1e-4, rtol=1e-4), \
        float(jnp.max(jnp.abs(out - ref)))
    print("KERNEL_OK")
</pallas_src>

<mosaic_0001>
module attributes {stable_mosaic.version = 11 : i64} {
  func.func @net_kernel(%arg0: i32, %arg1: memref<1x128xf32, #tpu.memory_space<vmem>>, %arg2: memref<128x2xf32, #tpu.memory_space<vmem>>, %arg3: memref<64x129xf32, #tpu.memory_space<vmem>>, %arg4: memref<32x65xf32, #tpu.memory_space<vmem>>, %arg5: memref<16x33xf32, #tpu.memory_space<vmem>>, %arg6: memref<2x49xf32, #tpu.memory_space<vmem>>, %arg7: memref<2x128xf32, #tpu.memory_space<vmem>>) attributes {dimension_semantics = [#tpu.dimension_semantics<parallel>], iteration_bounds = array<i64: 2>, scalar_prefetch = 0 : i64, scratch_operands = 0 : i64, tpu.core_type = #tpu.core_type<tc>, window_params = [{transform_indices = @transform_0, window_bounds = array<i64: 1, 128>}, {pipeline_mode = #tpu.pipeline_mode<synchronous>, transform_indices = @transform_1, window_bounds = array<i64: 128, 2>}, {pipeline_mode = #tpu.pipeline_mode<synchronous>, transform_indices = @transform_2, window_bounds = array<i64: 64, 129>}, {pipeline_mode = #tpu.pipeline_mode<synchronous>, transform_indices = @transform_3, window_bounds = array<i64: 32, 65>}, {pipeline_mode = #tpu.pipeline_mode<synchronous>, transform_indices = @transform_4, window_bounds = array<i64: 16, 33>}, {pipeline_mode = #tpu.pipeline_mode<synchronous>, transform_indices = @transform_5, window_bounds = array<i64: 2, 49>}, {transform_indices = @transform_6, window_bounds = array<i64: 2, 128>}]} {
    %c0 = arith.constant 0 : index
    %c0_0 = arith.constant 0 : index
    %0 = vector.load %arg1[%c0, %c0_0] : memref<1x128xf32, #tpu.memory_space<vmem>>, vector<1x128xf32>
    %c0_1 = arith.constant 0 : index
    %c0_2 = arith.constant 0 : index
    %1 = vector.load %arg2[%c0_1, %c0_2] : memref<128x2xf32, #tpu.memory_space<vmem>>, vector<128x2xf32>
    %2 = vector.extract_strided_slice %1 {offsets = [0, 0], sizes = [128, 1], strides = [1, 1]} : vector<128x2xf32> to vector<128x1xf32>
    %3 = vector.broadcast %2 : vector<128x1xf32> to vector<128x128xf32>
    %4 = vector.broadcast %0 : vector<1x128xf32> to vector<128x128xf32>
    %5 = arith.mulf %3, %4 : vector<128x128xf32>
    %6 = vector.extract_strided_slice %1 {offsets = [0, 1], sizes = [128, 1], strides = [1, 1]} : vector<128x2xf32> to vector<128x1xf32>
    %7 = vector.broadcast %6 : vector<128x1xf32> to vector<128x128xf32>
    %8 = arith.addf %5, %7 : vector<128x128xf32>
    %cst = arith.constant 0.000000e+00 : f32
    %9 = vector.broadcast %cst : f32 to vector<128x128xf32>
    %10 = arith.maximumf %8, %9 : vector<128x128xf32>
    %c0_3 = arith.constant 0 : index
    %c0_4 = arith.constant 0 : index
    %11 = vector.load %arg3[%c0_3, %c0_4] : memref<64x129xf32, #tpu.memory_space<vmem>>, vector<64x129xf32>
    %12 = vector.extract_strided_slice %11 {offsets = [0, 0], sizes = [64, 128], strides = [1, 1]} : vector<64x129xf32> to vector<64x128xf32>
    %cst_5 = arith.constant dense<0.000000e+00> : vector<64x128xf32>
    %13 = tpu.matmul %12, %10, %cst_5 {dimension_numbers = #tpu.dot_dimension_numbers<[1], [0], [0], [1], [0, 0, 1, 1], [], []>} : vector<64x128xf32>, vector<128x128xf32>, vector<64x128xf32> -> vector<64x128xf32>
    %14 = vector.extract_strided_slice %11 {offsets = [0, 128], sizes = [64, 1], strides = [1, 1]} : vector<64x129xf32> to vector<64x1xf32>
    %15 = vector.broadcast %14 : vector<64x1xf32> to vector<64x128xf32>
    %16 = arith.addf %13, %15 : vector<64x128xf32>
    %cst_6 = arith.constant 0.000000e+00 : f32
    %17 = vector.broadcast %cst_6 : f32 to vector<64x128xf32>
    %18 = arith.maximumf %16, %17 : vector<64x128xf32>
    %c0_7 = arith.constant 0 : index
    %c0_8 = arith.constant 0 : index
    %19 = vector.load %arg4[%c0_7, %c0_8] : memref<32x65xf32, #tpu.memory_space<vmem>>, vector<32x65xf32>
    %20 = vector.extract_strided_slice %19 {offsets = [0, 0], sizes = [32, 64], strides = [1, 1]} : vector<32x65xf32> to vector<32x64xf32>
    %cst_9 = arith.constant dense<0.000000e+00> : vector<32x128xf32>
    %21 = tpu.matmul %20, %18, %cst_9 {dimension_numbers = #tpu.dot_dimension_numbers<[1], [0], [0], [1], [0, 0, 1, 1], [], []>} : vector<32x64xf32>, vector<64x128xf32>, vector<32x128xf32> -> vector<32x128xf32>
    %22 = vector.extract_strided_slice %19 {offsets = [0, 64], sizes = [32, 1], strides = [1, 1]} : vector<32x65xf32> to vector<32x1xf32>
    %23 = vector.broadcast %22 : vector<32x1xf32> to vector<32x128xf32>
    %24 = arith.addf %21, %23 : vector<32x128xf32>
    %cst_10 = arith.constant 0.000000e+00 : f32
    %25 = vector.broadcast %cst_10 : f32 to vector<32x128xf32>
    %26 = arith.maximumf %24, %25 : vector<32x128xf32>
    %c0_11 = arith.constant 0 : index
    %c0_12 = arith.constant 0 : index
    %27 = vector.load %arg5[%c0_11, %c0_12] : memref<16x33xf32, #tpu.memory_space<vmem>>, vector<16x33xf32>
    %28 = vector.extract_strided_slice %27 {offsets = [0, 0], sizes = [16, 32], strides = [1, 1]} : vector<16x33xf32> to vector<16x32xf32>
    %cst_13 = arith.constant dense<0.000000e+00> : vector<16x128xf32>
    %29 = tpu.matmul %28, %26, %cst_13 {dimension_numbers = #tpu.dot_dimension_numbers<[1], [0], [0], [1], [0, 0, 1, 1], [], []>} : vector<16x32xf32>, vector<32x128xf32>, vector<16x128xf32> -> vector<16x128xf32>
    %30 = vector.extract_strided_slice %27 {offsets = [0, 32], sizes = [16, 1], strides = [1, 1]} : vector<16x33xf32> to vector<16x1xf32>
    %31 = vector.broadcast %30 : vector<16x1xf32> to vector<16x128xf32>
    %32 = arith.addf %29, %31 : vector<16x128xf32>
    %cst_14 = arith.constant 0.000000e+00 : f32
    %33 = vector.broadcast %cst_14 : f32 to vector<16x128xf32>
    %34 = arith.maximumf %32, %33 : vector<16x128xf32>
    %35 = tpu.concatenate %26, %34 in 0 : vector<32x128xf32>, vector<16x128xf32> -> vector<48x128xf32>
    %c0_15 = arith.constant 0 : index
    %c0_16 = arith.constant 0 : index
    %36 = vector.load %arg6[%c0_15, %c0_16] : memref<2x49xf32, #tpu.memory_space<vmem>>, vector<2x49xf32>
    %37 = vector.extract_strided_slice %36 {offsets = [0, 0], sizes = [2, 48], strides = [1, 1]} : vector<2x49xf32> to vector<2x48xf32>
    %cst_17 = arith.constant dense<0.000000e+00> : vector<2x128xf32>
    %38 = tpu.matmul %37, %35, %cst_17 {dimension_numbers = #tpu.dot_dimension_numbers<[1], [0], [0], [1], [0, 0, 1, 1], [], []>} : vector<2x48xf32>, vector<48x128xf32>, vector<2x128xf32> -> vector<2x128xf32>
    %39 = vector.extract_strided_slice %36 {offsets = [0, 48], sizes = [2, 1], strides = [1, 1]} : vector<2x49xf32> to vector<2x1xf32>
    %40 = vector.broadcast %39 : vector<2x1xf32> to vector<2x128xf32>
    %41 = arith.addf %38, %40 : vector<2x128xf32>
    %c0_18 = arith.constant 0 : index
    %c0_19 = arith.constant 0 : index
    %42 = vector.load %arg7[%c0_18, %c0_19] : memref<2x128xf32, #tpu.memory_space<vmem>>, vector<2x128xf32>
    tpu.vector_store %arg7[%c0_18, %c0_19], %41 {strides = array<i32>} : memref<2x128xf32, #tpu.memory_space<vmem>>, vector<2x128xf32>,
    return
  }
  func.func @transform_0(%arg0: i32) -> (i32, i32) {
    %c0_i32 = arith.constant 0 : i32
    %c0_i32_0 = arith.constant 0 : i32
    return %c0_i32, %arg0 : i32, i32
  }
  func.func @transform_1(%arg0: i32) -> (i32, i32) {
    %c0_i32 = arith.constant 0 : i32
    %c0_i32_0 = arith.constant 0 : i32
    %c0_i32_1 = arith.constant 0 : i32
    return %c0_i32, %c0_i32_0 : i32, i32
  }
  func.func @transform_2(%arg0: i32) -> (i32, i32) {
    %c0_i32 = arith.constant 0 : i32
    %c0_i32_0 = arith.constant 0 : i32
    %c0_i32_1 = arith.constant 0 : i32
    return %c0_i32, %c0_i32_0 : i32, i32
  }
  func.func @transform_3(%arg0: i32) -> (i32, i32) {
    %c0_i32 = arith.constant 0 : i32
    %c0_i32_0 = arith.constant 0 : i32
    %c0_i32_1 = arith.constant 0 : i32
    return %c0_i32, %c0_i32_0 : i32, i32
  }
  func.func @transform_4(%arg0: i32) -> (i32, i32) {
    %c0_i32 = arith.constant 0 : i32
    %c0_i32_0 = arith.constant 0 : i32
    %c0_i32_1 = arith.constant 0 : i32
    return %c0_i32, %c0_i32_0 : i32, i32
  }
  func.func @transform_5(%arg0: i32) -> (i32, i32) {
    %c0_i32 = arith.constant 0 : i32
    %c0_i32_0 = arith.constant 0 : i32
    %c0_i32_1 = arith.constant 0 : i32
    return %c0_i32, %c0_i32_0 : i32, i32
  }
  func.func @transform_6(%arg0: i32) -> (i32, i32) {
    %c0_i32 = arith.constant 0 : i32
    %c0_i32_0 = arith.constant 0 : i32
    return %c0_i32, %arg0 : i32, i32
  }
}

</mosaic_0001>

<bundles_post_ra>
// kernel: _lambda_.1
= control target key start
LH: loop header
LB: loop body
LE: loop exit
PB: predicated region body
PF: predicated region fallthrough
CT: control target
= control target key end

     0   :  { %s1468_s0 = inlined_call_operand.vmem [shape: f32[1,256], index: 0, kind: input, shape index: {}]   ;;  %s1469_s1 = inlined_call_operand.hbm [shape: f32[128,2], index: 1, kind: input, shape index: {}]   ;;  %s1470_s2 = inlined_call_operand.hbm [shape: f32[64,129], index: 2, kind: input, shape index: {}]   ;;  %s1471_s3 = inlined_call_operand.hbm [shape: f32[32,65], index: 3, kind: input, shape index: {}]   ;;  %s1472_s4 = inlined_call_operand.hbm [shape: f32[16,33], index: 4, kind: input, shape index: {}]   ;;  %s1473_s5 = inlined_call_operand.vmem [shape: f32[2,49], index: 5, kind: input, shape index: {}]   ;;  %s1474_s6 = inlined_call_operand.hbm [shape: f32[2,256], index: 6, kind: output, shape index: {}]  }
   0x1   :  { %1475 = sst [smem:[#allocation16_spill]] %s1469_s1 }
   0x2   :  { %1476 = sst [smem:[#allocation17_spill]] %s1470_s2 }
   0x3   :  { %11 = vsyncpa [#allocation3], 0 }
   0x4   :  { %12 = vsyncpa [#allocation6], 0 }
   0x5   :  { %13 = vsyncpa [#allocation9], 0 }
   0x6   :  { %14 = vsyncpa [#allocation4], 0 }
   0x7   :  { %16 = vsyncpa [#allocation4 + $0x1], 0  ;;  %s1298_s21 = smov 0   ;;  %s1300_s22 = smov 0  }
   0x8   :  { %s1302_s23 = smov 0   ;;  %s1304_s24 = smov 0  }
   0x9 LB: > { %s1319_s25 = sadd.s32 4294967295, %s1248_s24   ;;  %s879_s26 = sadd.s32 4294967294, %s1248_s24   ;;  %s1248_s24 = sphi %s1304_s24, %s1488_s24   ;;  %s1244_s23 = sphi %s1302_s23, %s1487_s23   ;;  %s1240_s22 = sphi %s1300_s22, %s1486_s22   ;;  %s1236_s21 = sphi %s1298_s21, %s1485_s21  }
   0xa   : > { %s1323_s27 = sadd.s32 1, %s1248_s24   ;;  %s160_s28 = sadd.s32 1, %s1244_s23 }
   0xb   : > { %s157_s29 = ssub.s32 %s1248_s24, %s1323_s27  ;;  %p170_p0 = scmp.ne.s32.totalorder %s1244_s23, %s1240_s22 }
   0xc   : > { %p158_p1 = scmp.eq.s32.totalorder %s157_s29, 0  ;;  %p171_p2 = scmp.eq.s32.totalorder %s1319_s25, 1 }
   0xd   : > { %p176_p3 = scmp.ne.s32.totalorder %s1240_s22, %s1236_s21  ;;  %p177_p4 = scmp.eq.s32.totalorder %s879_s26, 1 }
   0xe   : > { %s1334_s30 = scalar_select %p158_p1, %s1244_s23, %s160_s28  }
   0xf   : > { %p1336_p5 = por %p171_p2, %p170_p0  ;;  %p1340_p6 = por %p177_p4, %p176_p3 }
  0x10   : > { %1477 = sst [smem:[#allocation15_spill]] %s1334_s30  ;;  %p880_p7 = scmp.ge.s32.totalorder %s1248_s24, 1 }
  0x11   : > { %p184_p8 = scmp.lt.s32.totalorder %s1248_s24, 3  ;;  %p974_p9 = scmp.eq.s32.totalorder %s1319_s25, 0 }
  0x12   : > { %s1481_s2 = sld [smem:[#allocation17_spill]]  ;;  %s1250_s13 = smov [#allocation5]  }
  0x13   : > { %p1347_p10 = pnand %p880_p7, %p184_p8  ;;  %s211_s14 = sshll.u32 %s1250_s13, 4  ;;  %s212_s14 = int_to_ptr.vmem [resolvable:$true] %s211_s14 }
  0x14   : > { %s1483_s1 = sld [smem:[#allocation16_spill]]  ;;  %s1251_s19 = smov 256  }
  0x15   : > { %p957_p11 = pneg %p1347_p10  ;;  %s1252_s20 = smov 16  }
  0x16   : > { %s1253_s26 = smov [#allocation2]   ;;  %s1254_s29 = smov 128  }
  0x17   : > { %p1358_p12 = pnand %p974_p9, %p957_p11  ;;  %s197_s28 = sshll.u32 %s1253_s26, 4  ;;  %s198_s28 = int_to_ptr.vmem [resolvable:$true] %s197_s28 }
  0x18   : > { %s209_s12 = sshll.u32 %s1481_s2, 4  ;;  %s1255_s10 = smov 8   ;;  %s210_s12 = int_to_ptr.hbm [resolvable:$true] %s209_s12 }
  0x19   : > { %963 = dma.hbm_to_vmem [thread:$0]  (!%p1358_p12), %s210_s12, 2048, %s212_s14, [#allocation6], %s1251_s19, %s1251_s19, %s1252_s20  }
  0x1a   : > { %s195_s18 = sshll.u32 %s1483_s1, 4  ;;  %s223_s16 = sshll.u32 %s1471_s3, 4  ;;  %s196_s18 = int_to_ptr.hbm [resolvable:$true] %s195_s18  ;;  %s224_s16 = int_to_ptr.hbm [resolvable:$true] %s223_s16 }
  0x1b   : > { %960 = dma.hbm_to_vmem [thread:$0]  (!%p1358_p12), %s196_s18, 2048, %s198_s28, [#allocation3], %s1254_s29, %s1254_s29, %s1255_s10  }
  0x1c   : > { %s1256_s17 = smov [#allocation7]   ;;  %s237_s12 = sshll.u32 %s1472_s4, 4  ;;  %s238_s12 = int_to_ptr.hbm [resolvable:$true] %s237_s12 }
  0x1d   : > { %s225_s1 = sshll.u32 %s1256_s17, 4  ;;  %s1257_s14 = smov [#allocation8]   ;;  %s226_s1 = int_to_ptr.vmem [resolvable:$true] %s225_s1 }
  0x1e   : > { %966 = dma.hbm_to_vmem [thread:$0]  (!%p1358_p12), %s224_s16, 512, %s226_s1, [#allocation6], %s1254_s29, %s1254_s29, %s1255_s10  }
  0x1f   : > { %s239_s19 = sshll.u32 %s1257_s14, 4  ;;  %264 = sbr.rel (%p1347_p10) target bundleno = 871 (0x367), region = 44  ;;  %s240_s19 = int_to_ptr.vmem [resolvable:$true] %s239_s19 }
  0x20   : > { %969 = dma.hbm_to_vmem [thread:$0]  (!%p1358_p12), %s238_s12, 256, %s240_s19, [#allocation9], %s1254_s29, %s1254_s29, %s1255_s10  }
  0x24   : > { %1219 = dma.done.wait (%p974_p9), [#allocation3], 2048  }
  0x25   : > { %1221 = vsyncadd (%p974_p9), [#allocation3], 4294965248 }
  0x26   : > { %1223 = dma.done.wait (%p974_p9), [#allocation6], 2560  }
  0x27   : > { %1225 = vsyncadd (%p974_p9), [#allocation6], 4294964736 }
  0x28   : > { %1227 = dma.done.wait (%p974_p9), [#allocation9], 256  }
  0x29   : > { %1229 = vsyncadd (%p974_p9), [#allocation9], 4294967040  ;;  %p308_p13 = scmp.lt.s32.totalorder %s1319_s25, 1  ;;  %v1258_v0 = vmov 1   ;;  %v327_v1 = vld [vmem:[#allocation2 + $0x78] sm:$0xff]  ;;  %v325_v2 = vld [vmem:[#allocation2 + $0x68] sm:$0xff] }
  0x2a   : > { %1032 = vset.pattern.permute.xlu0 %v1258_v0  ;;  %1028 = vset.pattern.permute.xlu1 %v1258_v0  ;;  %v326_v3 = vld [vmem:[#allocation2 + $0x70] sm:$0xff]  ;;  %v1259_v4 = vmov 0   ;;  %v324_v5 = vld [vmem:[#allocation2 + $0x60] sm:$0xff]  ;;  %v323_v6 = vld [vmem:[#allocation2 + $0x58] sm:$0xff]  ;;  %vm652_vm0 = vcmask 523264   ;;  %vm706_vm1 = vcmask 261120  }
  0x2b   : > { %1030 = vset.pattern.permute.xlu2 %v1258_v0  ;;  %s1398_s1 = scalar_select %p308_p13, %s1319_s25, 1  ;;  %488 = vperm.xlu1 %1028, %v327_v1   ;;  %v322_v7 = vld [vmem:[#allocation2 + $0x50] sm:$0xff]  ;;  %v321_v8 = vld [vmem:[#allocation2 + $0x48] sm:$0xff]  ;;  %v316_v9 = vld [vmem:[#allocation2 + $0x20] sm:$0xff]  ;;  %vm742_vm2 = vcmask 392192  }
  0x2c   : > { %480 = vperm.xlu0 %1032, %v325_v2   ;;  %484 = vperm.xlu2 %1030, %v326_v3   ;;  %v320_v10 = vld [vmem:[#allocation2 + $0x40] sm:$0xff]  ;;  %v319_v11 = vld [vmem:[#allocation2 + $0x38] sm:$0xff]  ;;  %v318_v13 = vld [vmem:[#allocation2 + $0x30] sm:$0xff]  ;;  %s305_s28 = sand.u32 1, %s1240_s22   ;;  %s900_s10 = sshll.u32 %s1319_s25, 1 }
  0x2d   : > { %s310_s9 = scalar_lea.vmem %s1468_s0, %s1398_s1  ;;  %v315_v12 = vld [vmem:[#allocation2 + $0x18] sm:$0xff]  ;;  %v312_v14 = vld [vmem:[#allocation2] sm:$0xff]  ;;  %v317_v15 = vld [vmem:[#allocation2 + $0x28] sm:$0xff]  ;;  %s891_s29 = sshll.u32 %s305_s28, 1 }
  0x2e   : > { %v314_v16 = vld [vmem:[#allocation2 + $0x10] sm:$0xff]  ;;  %v313_v17 = vld [vmem:[#allocation2 + $0x8] sm:$0xff]  ;;  %v538_v19 = vld [vmem:[#allocation5 + $0x78] sm:$0xff]  ;;  %s777_s16 = scalar_lea.hbm %s1474_s6, %s900_s10  ;;  %s307_s17 = scalar_lea.vmem [#allocation10], %s891_s29 }
  0x2f   : > { %v532_v21 = vld [vmem:[#allocation5 + $0x48] sm:$0xff]  ;;  %v1415_v26 = vld [vmem:[%s310_s9] ss:$0 sm:$0xff]  ;;  %s779_s12 = sshll.u32 %s307_s17, 4  ;;  %s781_s14 = sshll.u32 %s777_s16, 4  ;;  %s780_s12 = int_to_ptr.vmem [resolvable:$true] %s779_s12  ;;  %s782_s14 = int_to_ptr.hbm [resolvable:$true] %s781_s14 }
  0x30   : > { %v528_v25 = vld [vmem:[#allocation5 + $0x28] sm:$0xff]  ;;  %s767_s19 = scalar_lea.sflag [#allocation4], %s305_s28  ;;  %s1188_s1 = sshra.s32 %s782_s14, 4  ;;  %s1189_s1 = int_to_ptr.hbm [resolvable:$true] %s1188_s1 }
  0x31   : > { %s1190_s2 = scalar_lea.hbm %s1189_s1, 2  ;;  %s1194_s9 = scalar_lea.hbm %s1474_s6, 4 }
  0x32   : > { %p1191_p0 = scmp.ne.s32.totalorder %s1189_s1, %s1190_s2  ;;  %p1195_p3 = scmp.lt.s32.totalorder %s1189_s1, %s1474_s6 }
  0x33   : > { %1029 = vset.pattern.permute.xlu1 %v1259_v4  ;;  %p1196_p4 = scmp.lt.s32.totalorder %s1194_s9, %s1190_s2 }
  0x34   : > { %1033 = vset.pattern.permute.xlu0 %v1259_v4  ;;  %395 = vperm.xlu1 %1029, %v325_v2   ;;  %p1192_p1 = pnand %p1191_p0, %p1336_p5 }
  0x35   : > { %405 = vperm.xlu0 %1033, %v327_v1   ;;  %1031 = vset.pattern.permute.xlu2 %v1259_v4  ;;  %p1197_p7 = por %p1196_p4, %p1195_p3 }
  0x36   : > { %390 = vperm.xlu2 %1031, %v324_v5   ;;  %p1193_p2 = pneg %p1192_p1 }
  0x38   : > { %p1198_p8 = pnand %p1197_p7, %p1193_p2 }
  0x3c   : > { %385 = vperm.xlu1 %1029, %v323_v6  }
  0x3d   : > { %400 = vperm.xlu0 %1033, %v326_v3  }
  0x3e   : > { %1034 = vset.pattern.permute.xlu2 %v1258_v0 }
  0x3f   : > { %476 = vperm.xlu2 %1034, %v324_v5  }
  0x44   : > { %380 = vperm.xlu1 %1029, %v322_v7  }
  0x45   : > { %375 = vperm.xlu0 %1033, %v321_v8  }
  0x47   : > { %472 = vperm.xlu2 %1034, %v323_v6  }
  0x4c   : > { %1035 = vset.pattern.permute.xlu1 %v1258_v0 }
  0x4d   : > { %350 = vperm.xlu0 %1033, %v316_v9   ;;  %468 = vperm.xlu1 %1035, %v322_v7  }
  0x4f   : > { %1036 = vset.pattern.permute.xlu2 %v1259_v4 }
  0x50   : > { %370 = vperm.xlu2 %1036, %v320_v10  }
  0x55   : > { %1039 = vset.pattern.permute.xlu0 %v1258_v0  ;;  %464 = vperm.xlu1 %1035, %v321_v8  }
  0x56   : > { %460 = vperm.xlu0 %1039, %v320_v10  }
  0x58   : > { %365 = vperm.xlu2 %1036, %v319_v11  }
  0x5d   : > { %1037 = vset.pattern.permute.xlu1 %v1259_v4 }
  0x5e   : > { %440 = vperm.xlu0 %1039, %v315_v12   ;;  %360 = vperm.xlu1 %1037, %v318_v13  }
  0x60   : > { %1038 = vset.pattern.permute.xlu2 %v1258_v0 }
  0x61   : > { %456 = vperm.xlu2 %1038, %v319_v11  }
  0x66   : > { %428 = vperm.xlu0 %1039, %v312_v14   ;;  %355 = vperm.xlu1 %1037, %v317_v15  }
  0x69   : > { %452 = vperm.xlu2 %1038, %v318_v13  }
  0x6e   : > { %1045 = vset.pattern.permute.xlu0 %v1259_v4  ;;  %1040 = vset.pattern.permute.xlu1 %v1258_v0 }
  0x6f   : > { %448 = vperm.xlu1 %1040, %v317_v15  }
  0x71   : > { %1041 = vset.pattern.permute.xlu2 %v1259_v4 }
  0x72   : > { %345 = vperm.xlu2 %1041, %v315_v12  }
  0x77   : > { %444 = vperm.xlu1 %1040, %v316_v9  }
  0x7a   : > { %340 = vperm.xlu2 %1041, %v314_v16  }
  0x7f   : > { %1042 = vset.pattern.permute.xlu1 %v1259_v4 }
  0x80   : > { %335 = vperm.xlu1 %1042, %v313_v17  }
  0x82   : > { %1043 = vset.pattern.permute.xlu2 %v1258_v0 }
  0x83   : > { %436 = vperm.xlu2 %1043, %v314_v16  }
  0x86   : > { %v485_v18 = vpop.permute.xlu2 %484 }
  0x88   : > { %330 = vperm.xlu1 %1042, %v312_v14  }
  0x8b   : > { %432 = vperm.xlu2 %1043, %v313_v17  }
  0x90   : > { %576 = vperm.xlu1 %1042, %v538_v19   ;;  %v391_v20 = vpop.permute.xlu2 %390 }
  0x91   : > { %v423_v36 = vmul.f32 %v1415_v26, %v391_v20 }
  0x93   : > { %1044 = vset.pattern.permute.xlu2 %v1259_v4 }
  0x98   : > { %561 = vperm.xlu1 %1042, %v532_v21  }
  0x99   : > { %v477_v22 = vpop.permute.xlu2 %476 }
  0x9a   : > { %v503_v42 = vadd.f32 %v477_v22, %v423_v36  ;;  %v524_v36 = vld [vmem:[#allocation5 + $0x8] sm:$0xff] }
  0x9c   : > { %v519_v48 = vmax.f32 %v503_v42, 0.0 }
  0x9d   : > { %v489_v23 = vpop.permute.xlu1 %488 }
  0x9e   : > { %v481_v24 = vpop.permute.xlu0 %480 }
  0xa0   : > { %551 = vperm.xlu1 %1042, %v528_v25  }
  0xa1   : > { %v473_v27 = vpop.permute.xlu2 %472 }
  0xa6   : > { %v396_v29 = vpop.permute.xlu1 %395 }
  0xa7   : > { %v406_v28 = vpop.permute.xlu0 %405  ;;  %v424_v33 = vmul.f32 %v1415_v26, %v396_v29 }
  0xa8   : > { %v426_v30 = vmul.f32 %v1415_v26, %v406_v28 }
  0xa9   : > { %v504_v39 = vadd.f32 %v481_v24, %v424_v33 }
  0xaa   : > { %v506_v31 = vadd.f32 %v489_v23, %v426_v30  ;;  %v371_v38 = vpop.permute.xlu2 %370 }
  0xab   : > { %v520_v44 = vmax.f32 %v504_v39, 0.0  ;;  %v419_v58 = vmul.f32 %v1415_v26, %v371_v38 }
  0xac   : > { %v522_v32 = vmax.f32 %v506_v31, 0.0  ;;  %v534_v31 = vld [vmem:[#allocation5 + $0x58] sm:$0xff] }
  0xad   : > { %566 = vperm.xlu0 %1045, %v534_v31  }
  0xae   : > { %579 = vmatpush.msra.mxu0 %v522_v32  ;;  %903 = vmatpush.msra.mxu2 %v522_v32  ;;  %v386_v35 = vpop.permute.xlu1 %385 }
  0xaf   : > { %904 = vmatpush.msra.mxu3 %v522_v32  ;;  %v401_v34 = vpop.permute.xlu0 %400  ;;  %v422_v41 = vmul.f32 %v1415_v26, %v386_v35  ;;  %v536_v32 = vld [vmem:[#allocation5 + $0x68] sm:$0xff] }
  0xb0   : > { %v425_v37 = vmul.f32 %v1415_v26, %v401_v34  ;;  %571 = vperm.xlu2 %1044, %v536_v32  }
  0xb1   : > { %v502_v45 = vadd.f32 %v473_v27, %v422_v41 }
  0xb2   : > { %v505_v40 = vadd.f32 %v485_v18, %v425_v37  ;;  %v366_v50 = vpop.permute.xlu2 %365  ;;  %v530_v37 = vld [vmem:[#allocation5 + $0x38] sm:$0xff] }
  0xb3   : > { %v518_v49 = vmax.f32 %v502_v45, 0.0  ;;  %v418_v59 = vmul.f32 %v1415_v26, %v366_v50  ;;  %v533_v45 = vld [vmem:[#allocation5 + $0x50] sm:$0xff] }
  0xb4   : > { %v521_v43 = vmax.f32 %v505_v40, 0.0  ;;  %v537_v50 = vld [vmem:[#allocation5 + $0x70] sm:$0xff] }
  0xb5   : > { %541 = vperm.xlu0 %1045, %v524_v36  }
  0xb6   : > { %580 = vmatpush.msra.mxu0 %v521_v43  ;;  %905 = vmatpush.msra.mxu2 %v521_v43  ;;  %v381_v46 = vpop.permute.xlu1 %380 }
  0xb7   : > { %906 = vmatpush.msra.mxu3 %v521_v43  ;;  %v376_v47 = vpop.permute.xlu0 %375  ;;  %v421_v51 = vmul.f32 %v1415_v26, %v381_v46  ;;  %v523_v43 = vld [vmem:[#allocation5] sm:$0xff]  ;;  %v526_v46 = vld [vmem:[#allocation5 + $0x18] sm:$0xff] }
  0xb8   : > { %581 = vmatpush.msra.mxu0 %v520_v44  ;;  %907 = vmatpush.msra.mxu2 %v520_v44  ;;  %v420_v57 = vmul.f32 %v1415_v26, %v376_v47  ;;  %v525_v47 = vld [vmem:[#allocation5 + $0x10] sm:$0xff] }
  0xb9   : > { %908 = vmatpush.msra.mxu3 %v520_v44  ;;  %556 = vperm.xlu2 %1044, %v530_v37   ;;  %v529_v44 = vld [vmem:[#allocation5 + $0x30] sm:$0xff] }
  0xba   : > { %582 = vmatpush.msra.mxu0 %v519_v48  ;;  %909 = vmatpush.msra.mxu2 %v519_v48 }
  0xbb   : > { %910 = vmatpush.msra.mxu3 %v519_v48  ;;  %v457_v56 = vpop.permute.xlu2 %456  ;;  %v531_v48 = vld [vmem:[#allocation5 + $0x40] sm:$0xff] }
  0xbc   : > { %583 = vmatpush.msra.mxu0 %v518_v49  ;;  %911 = vmatpush.msra.mxu2 %v518_v49  ;;  %v498_v0 = vadd.f32 %v457_v56, %v418_v59  ;;  %v1260_v56 = vmov 64  }
  0xbd   : > { %912 = vmatpush.msra.mxu3 %v518_v49  ;;  %v535_v49 = vld [vmem:[#allocation5 + $0x60] sm:$0xff]  ;;  %1046 = vset.pattern.permute.xlu1 %v1260_v56 }
  0xbe   : > { %v514_v4 = vmax.f32 %v498_v0, 0.0  ;;  %1048 = vset.pattern.permute.xlu0 %v1260_v56 }
  0xbf   : > { %v351_v52 = vpop.permute.xlu0 %350  ;;  %v469_v53 = vpop.permute.xlu1 %468 }
  0xc0   : > { %v501_v54 = vadd.f32 %v469_v53, %v421_v51  ;;  %v415_v18 = vmul.f32 %v1415_v26, %v351_v52 }
  0xc1   : > { %546 = vperm.xlu2 %1044, %v526_v46  }
  0xc2   : > { %v517_v55 = vmax.f32 %v501_v54, 0.0 }
  0xc3   : > { %v453_v2 = vpop.permute.xlu2 %452 }
  0xc4   : > { %584 = vmatpush.msra.mxu0 %v517_v55  ;;  %913 = vmatpush.msra.mxu2 %v517_v55 }
  0xc5   : > { %914 = vmatpush.msra.mxu3 %v517_v55  ;;  %v631_v55 = vld [vmem:[#allocation7 + $0x18] sm:$0xff] }
  0xc6   : > { %649 = vperm.xlu1 %1046, %v631_v55  }
  0xc7   : > { %v465_v60 = vpop.permute.xlu1 %464 }
  0xc8   : > { %v461_v61 = vpop.permute.xlu0 %460  ;;  %v500_v62 = vadd.f32 %v465_v60, %v420_v57  ;;  %v629_v57 = vld [vmem:[#allocation7 + $0x8] sm:$0xff] }
  0xc9   : > { %v499_v63 = vadd.f32 %v461_v61, %v419_v58  ;;  %639 = vperm.xlu0 %1048, %v629_v57   ;;  %1047 = vset.pattern.permute.xlu2 %v1260_v56  ;;  %v630_v61 = vld [vmem:[#allocation7 + $0x10] sm:$0xff] }
  0xca   : > { %v516_v1 = vmax.f32 %v500_v62, 0.0  ;;  %v628_v62 = vld [vmem:[#allocation7] sm:$0xff]  ;;  %644 = vperm.xlu2 %1047, %v630_v61  }
  0xcb   : > { %v515_v3 = vmax.f32 %v499_v63, 0.0 }
  0xcc   : > { %585 = vmatpush.msra.mxu0 %v516_v1  ;;  %915 = vmatpush.msra.mxu2 %v516_v1  ;;  %v346_v9 = vpop.permute.xlu2 %345 }
  0xcd   : > { %916 = vmatpush.msra.mxu3 %v516_v1  ;;  %v414_v16 = vmul.f32 %v1415_v26, %v346_v9 }
  0xce   : > { %586 = vmatpush.msra.mxu0 %v515_v3  ;;  %917 = vmatpush.msra.mxu2 %v515_v3 }
  0xcf   : > { %918 = vmatpush.msra.mxu3 %v515_v3  ;;  %634 = vperm.xlu1 %1046, %v628_v62  }
  0xd0   : > { %v361_v5 = vpop.permute.xlu1 %360  ;;  %587 = vmatpush.msra.mxu0 %v514_v4  ;;  %919 = vmatpush.msra.mxu2 %v514_v4  ;;  %v441_v17 = vpop.permute.xlu0 %440 }
  0xd1   : > { %v417_v6 = vmul.f32 %v1415_v26, %v361_v5  ;;  %920 = vmatpush.msra.mxu3 %v514_v4  ;;  %v494_v22 = vadd.f32 %v441_v17, %v414_v16 }
  0xd3   : > { %v497_v7 = vadd.f32 %v453_v2, %v417_v6  ;;  %v510_v27 = vmax.f32 %v494_v22, 0.0 }
  0xd4   : > { %v341_v11 = vpop.permute.xlu2 %340 }
  0xd5   : > { %v513_v8 = vmax.f32 %v497_v7, 0.0  ;;  %v413_v19 = vmul.f32 %v1415_v26, %v341_v11 }
  0xd7   : > { %588 = vmatpush.msra.mxu0 %v513_v8  ;;  %921 = vmatpush.msra.mxu2 %v513_v8 }
  0xd8   : > { %922 = vmatpush.msra.mxu3 %v513_v8  ;;  %v356_v10 = vpop.permute.xlu1 %355  ;;  %v429_v40 = vpop.permute.xlu0 %428 }
  0xd9   : > { %v416_v12 = vmul.f32 %v1415_v26, %v356_v10 }
  0xdd   : > { %v437_v20 = vpop.permute.xlu2 %436 }
  0xde   : > { %v493_v24 = vadd.f32 %v437_v20, %v413_v19 }
  0xe0   : > { %v509_v28 = vmax.f32 %v493_v24, 0.0 }
  0xe1   : > { %v449_v13 = vpop.permute.xlu1 %448 }
  0xe2   : > { %v496_v14 = vadd.f32 %v449_v13, %v416_v12 }
  0xe4   : > { %v512_v15 = vmax.f32 %v496_v14, 0.0 }
  0xe5   : > { %v433_v33 = vpop.permute.xlu2 %432 }
  0xe6   : > { %589 = vmatpush.msra.mxu0 %v512_v15  ;;  %923 = vmatpush.msra.mxu2 %v512_v15 }
  0xe7   : > { %924 = vmatpush.msra.mxu3 %v512_v15 }
  0xe9   : > { %v445_v21 = vpop.permute.xlu1 %444 }
  0xea   : > { %v495_v23 = vadd.f32 %v445_v21, %v415_v18 }
  0xec   : > { %v511_v25 = vmax.f32 %v495_v23, 0.0 }
  0xee   : > { %590 = vmatpush.msra.mxu0 %v511_v25  ;;  %925 = vmatpush.msra.mxu2 %v511_v25 }
  0xef   : > { %926 = vmatpush.msra.mxu3 %v511_v25  ;;  %v695_v25 = vld [vmem:[#allocation8 + $0x8] sm:$0xff] }
  0xf0   : > { %591 = vmatpush.msra.mxu0 %v510_v27  ;;  %927 = vmatpush.msra.mxu2 %v510_v27 }
  0xf1   : > { %928 = vmatpush.msra.mxu3 %v510_v27  ;;  %v694_v27 = vld [vmem:[#allocation8] sm:$0xff] }
  0xf2   : > { %v336_v29 = vpop.permute.xlu1 %335  ;;  %592 = vmatpush.msra.mxu0 %v509_v28  ;;  %929 = vmatpush.msra.mxu2 %v509_v28 }
  0xf3   : > { %v412_v30 = vmul.f32 %v1415_v26, %v336_v29  ;;  %930 = vmatpush.msra.mxu3 %v509_v28  ;;  %v1261_v28 = vmov 32  }
  0xf4   : > { %1050 = vset.pattern.permute.xlu1 %v1261_v28  ;;  %1049 = vset.pattern.permute.xlu2 %v1261_v28 }
  0xf5   : > { %v492_v34 = vadd.f32 %v433_v33, %v412_v30  ;;  %698 = vperm.xlu1 %1050, %v694_v27   ;;  %703 = vperm.xlu2 %1049, %v695_v25  }
  0xf7   : > { %v508_v35 = vmax.f32 %v492_v34, 0.0 }
  0xf9   : > { %593 = vmatpush.msra.mxu0 %v508_v35  ;;  %931 = vmatpush.msra.mxu2 %v508_v35 }
  0xfa   : > { %932 = vmatpush.msra.mxu3 %v508_v35  ;;  %v331_v38 = vpop.permute.xlu1 %330 }
  0xfb   : > { %v411_v39 = vmul.f32 %v1415_v26, %v331_v38  ;;  %v527_v26 = vld [vmem:[#allocation5 + $0x20] sm:$0xff] }
  0xfd   : > { %v491_v41 = vadd.f32 %v429_v40, %v411_v39 }
  0xff   : > { %v507_v42 = vmax.f32 %v491_v41, 0.0 }
 0x101   : > { %594 = vmatpush.msra.mxu0 %v507_v42  ;;  %933 = vmatpush.msra.mxu2 %v507_v42 }
 0x102   : > { %934 = vmatpush.msra.mxu3 %v507_v42  ;;  %595 = vmatmul.f32.vlgmr.msra.gmra.mxu0 %v523_v43  ;;  %v577_v53 = vpop.permute.xlu1 %576 }
 0x103   : > { %604 = vmatmul.f32.vlgmr.msra.gmra.mxu2 %v529_v44  ;;  %610 = vmatmul.f32.vlgmr.msra.gmra.mxu3 %v533_v45  ;;  %v736_v44 = vld [vmem:[%s1473_s5] sm:$0x3]  ;;  %v1262_v45 = vmov 48  }
 0x104   : > { %1051 = vset.pattern.permute.xlu2 %v1262_v45  ;;  %1052 = vset.pattern.permute.xlu0 %v1262_v45 }
 0x105   : > { %739 = vperm.xlu2 %1051, %v736_v44  }
 0x10a   : > { %598 = vmatmul.f32.gmra.mxu0 %v525_v47  ;;  %v572_v54 = vpop.permute.xlu2 %571  ;;  %v562_v63 = vpop.permute.xlu1 %561 }
 0x10b   : > { %607 = vmatmul.f32.gmra.mxu2 %v531_v48  ;;  %613 = vmatmul.f32.gmra.mxu3 %v535_v49 }
 0x112   : > { %601 = vmatmul.f32.gmra.mxu0 %v527_v26  ;;  %v552_v13 = vpop.permute.xlu1 %551 }
 0x113   : > { %616 = vmatmul.f32.gmra.mxu3 %v537_v50  ;;  %v557_v0 = vpop.permute.xlu2 %556 }
 0x11b   : > { %v547_v14 = vpop.permute.xlu2 %546 }
 0x11f   : > { %v567_v1 = vpop.permute.xlu0 %566 }
 0x124   : > { %v645_v32 = vpop.permute.xlu2 %644 }
 0x127   : > { %v542_v17 = vpop.permute.xlu0 %541 }
 0x138   : > { %v650_v30 = vpop.permute.xlu1 %649 }
 0x13b   : > { %v640_v33 = vpop.permute.xlu0 %639 }
 0x141   : > { %v635_v37 = vpop.permute.xlu1 %634 }
 0x14f   : > { %v704_v48 = vpop.permute.xlu2 %703 }
 0x167   : > { %v699_v46 = vpop.permute.xlu1 %698 }
 0x17f   : > { %v596_v52 = vpop.f32.mrf.mxu0 }
 0x180   : > { %v597_v20 = vadd.f32 %v596_v52, %v542_v17 }
 0x182   : > { %v620_v23 = vmax.f32 %v597_v20, 0.0 }
 0x186   : > { %v611_v51 = vpop.f32.mrf.mxu3  ;;  %v605_v58 = vpop.f32.mrf.mxu2 }
 0x187   : > { %v599_v60 = vpop.f32.mrf.mxu0  ;;  %v612_v6 = vadd.f32 %v611_v51, %v567_v1  ;;  %v606_v12 = vadd.f32 %v605_v58, %v557_v0 }
 0x188   : > { %v600_v19 = vadd.f32 %v599_v60, %v547_v14 }
 0x189   : > { %v625_v11 = vmax.f32 %v612_v6, 0.0  ;;  %v623_v18 = vmax.f32 %v606_v12, 0.0 }
 0x18a   : > { %v621_v22 = vmax.f32 %v600_v19, 0.0 }
 0x18e   : > { %v614_v59 = vpop.f32.mrf.mxu3  ;;  %v608_v5 = vpop.f32.mrf.mxu2 }
 0x18f   : > { %v615_v3 = vadd.f32 %v614_v59, %v572_v54  ;;  %v609_v8 = vadd.f32 %v608_v5, %v562_v63  ;;  %v602_v10 = vpop.f32.mrf.mxu0 }
 0x190   : > { %v603_v16 = vadd.f32 %v602_v10, %v552_v13 }
 0x191   : > { %v626_v9 = vmax.f32 %v615_v3, 0.0  ;;  %v624_v15 = vmax.f32 %v609_v8, 0.0 }
 0x192   : > { %v622_v21 = vmax.f32 %v603_v16, 0.0 }
 0x196   : > { %v617_v2 = vpop.f32.mrf.mxu3 }
 0x197   : > { %v618_v4 = vadd.f32 %v617_v2, %v577_v53  ;;  %v740_v53 = vpop.permute.xlu2 %739 }
 0x199   : > { %v627_v7 = vmax.f32 %v618_v4, 0.0 }
 0x19b   : > { %669 = vmatpush.msra.mxu1 %v627_v7 }
 0x19d   : > { %670 = vmatpush.msra.mxu1 %v626_v9 }
 0x19f   : > { %671 = vmatpush.msra.mxu1 %v625_v11 }
 0x1a1   : > { %672 = vmatpush.msra.mxu1 %v624_v15 }
 0x1a3   : > { %673 = vmatpush.msra.mxu1 %v623_v18 }
 0x1a5   : > { %674 = vmatpush.msra.mxu1 %v622_v21 }
 0x1a7   : > { %675 = vmatpush.msra.mxu1 %v621_v22 }
 0x1a9   : > { %676 = vmatpush.msra.mxu1 %v620_v23 }
 0x1aa   : > { %892 = vmatmul.msk.f32.vlgmr.msra.gmra.mxu1 %vm652_vm0, %v628_v62 }
 0x1b2   : > { %893 = vmatmul.msk.f32.gmra.mxu1 %vm652_vm0, %v629_v57 }
 0x1ba   : > { %894 = vmatmul.msk.f32.gmra.mxu1 %vm652_vm0, %v630_v61 }
 0x1c2   : > { %895 = vmatmul.msk.f32.gmra.mxu1 %vm652_vm0, %v631_v55 }
 0x227   : > { %v678_v24 = vpop.f32.mrf.mxu1 }
 0x228   : > { %v679_v40 = vadd.f32 %v678_v24, %v635_v37 }
 0x22a   : > { %v690_v43 = vmax.f32 %v679_v40, 0.0 }
 0x22f   : > { %v681_v29 = vpop.f32.mrf.mxu1 }
 0x230   : > { %v682_v38 = vadd.f32 %v681_v29, %v640_v33 }
 0x232   : > { %v691_v42 = vmax.f32 %v682_v38, 0.0 }
 0x237   : > { %v684_v31 = vpop.f32.mrf.mxu1 }
 0x238   : > { %v685_v35 = vadd.f32 %v684_v31, %v645_v32 }
 0x23a   : > { %v692_v41 = vmax.f32 %v685_v35, 0.0 }
 0x23f   : > { %v687_v34 = vpop.f32.mrf.mxu1 }
 0x240   : > { %v688_v36 = vadd.f32 %v687_v34, %v650_v30 }
 0x242   : > { %v693_v39 = vmax.f32 %v688_v36, 0.0 }
 0x244   : > { %723 = vmatpush.msrb.mxu1 %v693_v39  ;;  %935 = vmatpush.msrb.mxu2 %v693_v39 }
 0x246   : > { %724 = vmatpush.msrb.mxu1 %v692_v41  ;;  %936 = vmatpush.msrb.mxu2 %v692_v41 }
 0x248   : > { %725 = vmatpush.msrb.mxu1 %v691_v42  ;;  %937 = vmatpush.msrb.mxu2 %v691_v42 }
 0x24a   : > { %726 = vmatpush.msrb.mxu1 %v690_v43  ;;  %938 = vmatpush.msrb.mxu2 %v690_v43 }
 0x24b   : > { %897 = vmatmul.msk.f32.vlgmr.msrb.gmra.mxu2 %vm706_vm1, %v695_v25  ;;  %896 = vmatmul.msk.f32.vlgmr.msrb.gmra.mxu1 %vm706_vm1, %v694_v27 }
 0x2c8   : > { %v728_v47 = vpop.f32.mrf.mxu1 }
 0x2c9   : > { %v729_v49 = vadd.f32 %v728_v47, %v699_v46 }
 0x2cb   : > { %v734_v52 = vmax.f32 %v729_v49, 0.0 }
 0x2ce   : > { %v731_v26 = vpop.f32.mrf.mxu2 }
 0x2cf   : > { %v732_v50 = vadd.f32 %v731_v26, %v704_v48 }
 0x2d1   : > { %v735_v51 = vmax.f32 %v732_v50, 0.0 }
 0x2d3   : > { %755 = vmatpush.msrb.mxu3 %v735_v51 }
 0x2d5   : > { %756 = vmatpush.msrb.mxu3 %v734_v52 }
 0x2d7   : > { %757 = vmatpush.msrb.mxu3 %v693_v39 }
 0x2d9   : > { %758 = vmatpush.msrb.mxu3 %v692_v41 }
 0x2db   : > { %759 = vmatpush.msrb.mxu3 %v691_v42 }
 0x2dd   : > { %760 = vmatpush.msrb.mxu3 %v690_v43 }
 0x2de   : > { %898 = vmatmul.msk.f32.vlgmr.msrb.gmra.mxu3 %vm742_vm2, %v736_v44 }
 0x361   : > { %v762_v54 = vpop.f32.mrf.mxu3 }
 0x362   : > { %v763_v55 = vadd.f32 %v762_v54, %v740_v53 }
 0x364   : > { %765 = vst [vmem:[%s307_s17] sm:$0x3] %v763_v55 }
 0x365   : > { %1201 = shalt.err (!%p1198_p8)
}
 0x366   : > { %955 = dma.vmem_to_hbm [thread:$0]  (%p1336_p5), %s780_s12, 32, %s782_s14, %s767_s19  }
 0x367 PF: > { %p982_p9 = scmp.ge.s32.totalorder %s1248_s24, 2  ;;  %s793_s20 = sand.u32 1, %s1236_s21  }
 0x368   : > { %s794_s26 = scalar_lea.sflag [#allocation4], %s793_s20 }
 0x369   : > { %p971_p10 = pnand %p982_p9, %p1340_p6 }
 0x36b   : > { %p972_p11 = pneg %p971_p10 }
 0x36d   : > { %1231 = dma.done.wait (%p972_p11), %s794_s26, 32  }
 0x36e   : > { %1233 = vsyncadd (%p972_p11), %s794_s26, 4294967264  ;;  %s1484_s28 = sld [smem:[#allocation15_spill]]  ;;  %p19_p12 = scmp.ge.s32.totalorder %s1323_s27, 4  }
 0x36f   : > { %s1485_s21 = smov %s1240_s22  ;;  %s1486_s22 = smov %s1244_s23 }
 0x370   : > { %s1488_s24 = smov %s1323_s27  ;;  %21 = sbr.rel (!%p19_p12) target bundleno = 9 (0x9), region = 96 }
 0x374   : > { %s1487_s23 = smov %s1484_s28 }
 0x375   :  { %800 = vsyncpa [#allocation3], 1 }
 0x376   :  { %802 = vsyncpa [#allocation3 + $0x1], 1 }
 0x377   :  { %803 = vsyncpa [#allocation6], 1 }
 0x378   :  { %804 = vsyncpa [#allocation9], 1 }
 0x379   :  { %805 = vsyncpa [#allocation4], 1 }
 0x37a   :  { %807 = vsyncpa [#allocation4 + $0x1], 1 }

</bundles_post_ra>
